<compile_context>
chip_gen: v5e
topology: v5e:2x2
jax: 0.10.0
libtpu: 0.0.40
codegen_flags: <defaults>
</compile_context>

<pallas_src>
import jax
import jax.numpy as jnp
from jax.experimental import pallas as pl
from jax.experimental.pallas import tpu as pltpu


def _bottom_classifier_kernel(x_ref, pos_ref, align_ref, out_ref):
    """out_ref[i] = align_ref[ x_ref[ pos_ref[i] ] ]   (all refs 1-D in SMEM).

    Fully unrolled over the (static, tiny) number of spans, with in-kernel
    clamping of both gather indices (SMEM has no OOB check).
    """
    seq_len = x_ref.shape[0]
    vocab = align_ref.shape[0]
    num_spans = out_ref.shape[0]

    for i in range(num_spans):  # static trip count -> straight-line scalar code
        p = pos_ref[i]                                   # span start (SMEM sld)
        p = jnp.minimum(jnp.maximum(p, 0), seq_len - 1)  # clamp position
        tok = x_ref[p]                                   # input token id
        tok = jnp.minimum(jnp.maximum(tok, 0), vocab - 1)  # clamp token id
        out_ref[i] = align_ref[tok]                      # aligned output id


def bottom_classifier_ids(x, span_starts, align_table):
    """Single-launch Pallas wrapper.

    x:           int32 [1, seq_len]   token-id sequence (module only uses batch 0)
    span_starts: int32 [num_spans]    bottom_span[i][0], all spans in ONE call
    align_table: int32 [in_vocab]     alignments_idx flattened (single alignment
                                      per input token, as asserted in PyTorch)
    returns:     int32 [num_spans]    aligned output token ids
    """
    x_flat = x[0].astype(jnp.int32)                     # keep 1-D for SMEM layout
    span_starts = jnp.asarray(span_starts, dtype=jnp.int32)
    align_table = jnp.asarray(align_table, dtype=jnp.int32)

    num_spans = span_starts.shape[0]

    return pl.pallas_call(
        _bottom_classifier_kernel,
        out_shape=jax.ShapeDtypeStruct((num_spans,), jnp.int32),
        in_specs=[
            pl.BlockSpec(memory_space=pltpu.SMEM),   # x_flat      [seq_len]
            pl.BlockSpec(memory_space=pltpu.SMEM),   # span_starts [num_spans]
            pl.BlockSpec(memory_space=pltpu.SMEM),   # align_table [in_vocab]
        ],
        out_specs=pl.BlockSpec(memory_space=pltpu.SMEM),
    )(x_flat, span_starts, align_table)


if __name__ == "__main__":
    key = jax.random.PRNGKey(0)

    # Small deterministic synthetic setup consistent with the module.
    seq_len = 8
    in_vocab = 16
    out_vocab = 16

    # output_lang.index2word: deterministic synthetic vocabulary.
    index2word = [f"tok_{i}" for i in range(out_vocab)]

    # alignments_idx: each input token id maps to exactly one output token id
    # (the PyTorch forward asserts len(output_idx) == 1; that invariant is
    # enforced here when the flat align_table is built).
    alignments_idx = {i: [(3 * i + 1) % out_vocab] for i in range(in_vocab)}
    for v, idxs in alignments_idx.items():
        assert len(idxs) == 1
    align_table = jnp.array([alignments_idx[i][0] for i in range(in_vocab)],
                            dtype=jnp.int32)

    # x: [1, seq_len] int32 token ids.
    x = jax.random.randint(key, (1, seq_len), 0, in_vocab, dtype=jnp.int32)

    # bottom_span: list of [start, end] spans over the sequence.
    bottom_span = [[2, 3], [5, 6], [0, 1]]
    span_starts = jnp.array([s[0] for s in bottom_span], dtype=jnp.int32)

    # Run the Pallas kernel once (single launch covering every span).
    out_ids = bottom_classifier_ids(x, span_starts, align_table)
    out_ids = jax.block_until_ready(out_ids)

    # Plain-XLA reference of the device hot path (double gather).
    xla_ref = jax.block_until_ready(align_table[x[0, span_starts]])
    assert jnp.array_equal(out_ids, xla_ref), (out_ids, xla_ref)

    # Glue: map aligned output ids to word strings, exactly as the module does.
    # TODO(synk): output_lang.index2word string lookup has no tensor/Pallas
    # equivalent; it stays in Python.
    span2output_token = [[span, index2word[int(idx)]]
                         for span, idx in zip(bottom_span, out_ids)]

    # Pure-Python reference of the original PyTorch forward pass.
    x_host = jax.device_get(x)
    ref = []
    for span in bottom_span:
        position = span[0]
        input_idx = int(x_host[0, position])
        output_idx = alignments_idx[input_idx]
        assert len(output_idx) == 1
        ref.append([span, index2word[output_idx[0]]])

    assert span2output_token == ref, (span2output_token, ref)
    print("KERNEL_OK")
</pallas_src>

<mosaic_0001>
module attributes {stable_mosaic.version = 11 : i64} {
  func.func @_bottom_classifier_kernel(%arg0: memref<8xi32, #tpu.memory_space<smem>>, %arg1: memref<3xi32, #tpu.memory_space<smem>>, %arg2: memref<16xi32, #tpu.memory_space<smem>>, %arg3: memref<3xi32, #tpu.memory_space<smem>>) attributes {dimension_semantics = [], scalar_prefetch = 0 : i64, scratch_operands = 0 : i64, tpu.core_type = #tpu.core_type<tc>} {
    %c0 = arith.constant 0 : index
    %0 = memref.load %arg1[%c0] : memref<3xi32, #tpu.memory_space<smem>>
    %c0_i32 = arith.constant 0 : i32
    %1 = arith.maxsi %0, %c0_i32 : i32
    %c7_i32 = arith.constant 7 : i32
    %2 = arith.minsi %1, %c7_i32 : i32
    %3 = arith.index_cast %2 : i32 to index
    %4 = memref.load %arg0[%3] : memref<8xi32, #tpu.memory_space<smem>>
    %c0_i32_0 = arith.constant 0 : i32
    %5 = arith.maxsi %4, %c0_i32_0 : i32
    %c15_i32 = arith.constant 15 : i32
    %6 = arith.minsi %5, %c15_i32 : i32
    %7 = arith.index_cast %6 : i32 to index
    %8 = memref.load %arg2[%7] : memref<16xi32, #tpu.memory_space<smem>>
    %c0_1 = arith.constant 0 : index
    %9 = memref.load %arg3[%c0_1] : memref<3xi32, #tpu.memory_space<smem>>
    memref.store %8, %arg3[%c0_1] : memref<3xi32, #tpu.memory_space<smem>>
    %c1 = arith.constant 1 : index
    %10 = memref.load %arg1[%c1] : memref<3xi32, #tpu.memory_space<smem>>
    %c0_i32_2 = arith.constant 0 : i32
    %11 = arith.maxsi %10, %c0_i32_2 : i32
    %c7_i32_3 = arith.constant 7 : i32
    %12 = arith.minsi %11, %c7_i32_3 : i32
    %13 = arith.index_cast %12 : i32 to index
    %14 = memref.load %arg0[%13] : memref<8xi32, #tpu.memory_space<smem>>
    %c0_i32_4 = arith.constant 0 : i32
    %15 = arith.maxsi %14, %c0_i32_4 : i32
    %c15_i32_5 = arith.constant 15 : i32
    %16 = arith.minsi %15, %c15_i32_5 : i32
    %17 = arith.index_cast %16 : i32 to index
    %18 = memref.load %arg2[%17] : memref<16xi32, #tpu.memory_space<smem>>
    %c1_6 = arith.constant 1 : index
    %19 = memref.load %arg3[%c1_6] : memref<3xi32, #tpu.memory_space<smem>>
    memref.store %18, %arg3[%c1_6] : memref<3xi32, #tpu.memory_space<smem>>
    %c2 = arith.constant 2 : index
    %20 = memref.load %arg1[%c2] : memref<3xi32, #tpu.memory_space<smem>>
    %c0_i32_7 = arith.constant 0 : i32
    %21 = arith.maxsi %20, %c0_i32_7 : i32
    %c7_i32_8 = arith.constant 7 : i32
    %22 = arith.minsi %21, %c7_i32_8 : i32
    %23 = arith.index_cast %22 : i32 to index
    %24 = memref.load %arg0[%23] : memref<8xi32, #tpu.memory_space<smem>>
    %c0_i32_9 = arith.constant 0 : i32
    %25 = arith.maxsi %24, %c0_i32_9 : i32
    %c15_i32_10 = arith.constant 15 : i32
    %26 = arith.minsi %25, %c15_i32_10 : i32
    %27 = arith.index_cast %26 : i32 to index
    %28 = memref.load %arg2[%27] : memref<16xi32, #tpu.memory_space<smem>>
    %c2_11 = arith.constant 2 : index
    %29 = memref.load %arg3[%c2_11] : memref<3xi32, #tpu.memory_space<smem>>
    memref.store %28, %arg3[%c2_11] : memref<3xi32, #tpu.memory_space<smem>>
    return
  }
}

</mosaic_0001>

<bundles_post_ra>
// kernel: tpu_custom_call.1
= control target key start
LH: loop header
LB: loop body
LE: loop exit
PB: predicated region body
PF: predicated region fallthrough
CT: control target
= control target key end

     0   :  { %8 = vsyncpa [#allocation3], 0  ;;  %s249_s0 = inlined_call_operand.hbm [shape: s32[8], index: 0, kind: input, shape index: {}]   ;;  %s250_s1 = inlined_call_operand.hbm [shape: s32[3], index: 1, kind: input, shape index: {}]   ;;  %s251_s2 = inlined_call_operand.vmem [shape: s32[16], index: 2, kind: input, shape index: {}]   ;;  %s252_s3 = inlined_call_operand.hbm [shape: s32[3], index: 3, kind: output, shape index: {}]  }
   0x1   :  { %9 = vsyncpa [#allocation7], 0 }
   0x2   :  { %10 = vsyncpa [#allocation5], 0 }
   0x3   :  { %11 = vsyncpa [#allocation4], 0  ;;  %s17_s14 = sshll.u32 %s249_s0, 4  ;;  %s26_s17 = sshll.u32 %s250_s1, 4  ;;  %s18_s14 = int_to_ptr.hbm [resolvable:$true] %s17_s14  ;;  %s27_s17 = int_to_ptr.hbm [resolvable:$true] %s26_s17 }
   0x4   :  { %s213_s18 = smov [#allocation2]   ;;  %s214_s19 = smov [#allocation6]  }
   0x5   :  { %20 = dma.hbm_to_smem %s18_s14, 16, %s213_s18, [#allocation3]  }
   0x6   :  { %29 = dma.hbm_to_smem %s27_s17, 16, %s214_s19, [#allocation7]  }
   0x7   :  { %s35_s22 = sshll.u32 %s251_s2, 4  ;;  %s215_s23 = smov [#allocation8]   ;;  %s36_s22 = int_to_ptr.vmem [resolvable:$true] %s35_s22 }
   0x8   :  { %38 = dma.vmem_to_smem %s36_s22, 16, %s215_s23, [#allocation5]  }
   0x9   :  { %205 = dma.done.wait [#allocation3], 16  }
   0xa   :  { %206 = vsyncadd [#allocation3], 4294967280 }
   0xb   :  { %207 = dma.done.wait [#allocation7], 16  }
   0xc   :  { %208 = vsyncadd [#allocation7], 4294967280 }
   0xd   :  { %209 = dma.done.wait [#allocation5], 16  }
   0xe   :  { %210 = vsyncadd [#allocation5], 4294967280 }
   0xf   :  { %51 = sfence }
  0x10   :  { %s52_s0 = sld [smem:[#allocation6]]  ;;  %s96_s5 = sshll.u32 %s252_s3, 4  ;;  %s97_s5 = int_to_ptr.hbm [resolvable:$true] %s96_s5 }
  0x11   :  { %s119_s1 = sld [smem:[#allocation6 + $0x1]]  ;;  %s216_s6 = smov [#allocation9]  }
  0x12   :  { %s130_s24 = sld [smem:[#allocation6 + $0x2]] }
  0x16   :  { %p53_p0 = scmp.gt.s32.totalorder %s52_s0, 0  ;;  %p109_p1 = scmp.lt.s32.totalorder %s52_s0, 7 }
  0x17   :  { %p66_p2 = scmp.gt.s32.totalorder %s119_s1, 0  ;;  %p120_p3 = scmp.lt.s32.totalorder %s119_s1, 7 }
  0x18   :  { %s254_s0 = smov (!%p53_p0, %s52_s0), 0  ;;  %p79_p4 = scmp.gt.s32.totalorder %s130_s24, 0 }
  0x19   :  { %s256_s1 = smov (!%p66_p2, %s119_s1), 0  ;;  %s258_s0 = smov (!%p109_p1, %s254_s0), 7 }
  0x1a   :  { %s260_s1 = smov (!%p120_p3, %s256_s1), 7  ;;  %s57_s2 = sld [smem:[#allocation2 + %s258_s0]] }
  0x1b   :  { %s70_s25 = sld [smem:[#allocation2 + %s260_s1]]  ;;  %p131_p5 = scmp.lt.s32.totalorder %s130_s24, 7 }
  0x1c   :  { %s262_s24 = smov (!%p79_p4, %s130_s24), 0 }
  0x1d   :  { %s264_s24 = smov (!%p131_p5, %s262_s24), 7 }
  0x1e   :  { %s83_s28 = sld [smem:[#allocation2 + %s264_s24]] }
  0x20   :  { %p58_p6 = scmp.gt.s32.totalorder %s57_s2, 0  ;;  %p114_p7 = scmp.lt.s32.totalorder %s57_s2, 15 }
  0x21   :  { %p71_p8 = scmp.gt.s32.totalorder %s70_s25, 0  ;;  %p125_p9 = scmp.lt.s32.totalorder %s70_s25, 15 }
  0x22   :  { %s266_s2 = smov (!%p58_p6, %s57_s2), 0 }
  0x23   :  { %s268_s25 = smov (!%p71_p8, %s70_s25), 0  ;;  %s270_s2 = smov (!%p114_p7, %s266_s2), 15 }
  0x24   :  { %s272_s25 = smov (!%p125_p9, %s268_s25), 15  ;;  %s62_s26 = sld [smem:[#allocation8 + %s270_s2]] }
  0x25   :  { %s75_s27 = sld [smem:[#allocation8 + %s272_s25]]  ;;  %p84_p10 = scmp.gt.s32.totalorder %s83_s28, 0 }
  0x26   :  { %p136_p11 = scmp.lt.s32.totalorder %s83_s28, 15 }
  0x27   :  { %s274_s28 = smov (!%p84_p10, %s83_s28), 0 }
  0x28   :  { %s276_s28 = smov (!%p136_p11, %s274_s28), 15 }
  0x29   :  { %s88_s29 = sld [smem:[#allocation8 + %s276_s28]] }
  0x2a   :  { %64 = sst [smem:[#allocation9]] %s62_s26 }
  0x2b   :  { %77 = sst [smem:[#allocation9 + $0x1]] %s75_s27 }
  0x2f   :  { %90 = sst [smem:[#allocation9 + $0x2]] %s88_s29 }
  0x30   :  { %99 = dma.smem_to_hbm %s216_s6, 16, %s97_s5, [#allocation4]  }
  0x31   :  { %211 = dma.done.wait [#allocation4], 16  }
  0x32   :  { %212 = vsyncadd [#allocation4], 4294967280 }
  0x33   :  { %104 = sfence }
  0x34   :  { %105 = vsyncpa [#allocation3], 1 }
  0x35   :  { %106 = vsyncpa [#allocation7], 1 }
  0x36   :  { %107 = vsyncpa [#allocation4], 1 }
  0x37   :  { %108 = vsyncpa [#allocation5], 1 }

</bundles_post_ra>
